<compile_context>
chip_gen: v7x
topology: tpu7x:2x2x1
jax: 0.10.0
libtpu: 0.0.40
codegen_flags: <defaults>
</compile_context>

<pallas_src>
import math

import jax
import jax.numpy as jnp
import numpy as np
from jax.experimental import pallas as pl
from jax.experimental.pallas import tpu as pltpu

# --------------------------- config ------------------------------------------
INPUT_DIM = 4
DELAY = 4
HIDDEN = 8          # hidden_dim
BOTTLENECK = 8      # bottleneck_dim (defaults to hidden_dim); % DELAY == 0
MULT = 3            # hidden_mults = [3]
B = 16              # example batch (sublane-full multiple of TB)
TB = 8              # batch tile = 8 rows -> full sublanes per vreg

IN = INPUT_DIM * DELAY            # 16  flattened input width
H2 = 2 * HIDDEN                   # 16  [real | imag] width at hidden dim
H3x2 = 2 * MULT * HIDDEN          # 48  [real | imag] width at 3*hidden
BN2 = 2 * BOTTLENECK              # 16
BN3x2 = 2 * MULT * BOTTLENECK     # 48

# ---- weight slab layout: (W_ROWS, W_COLS) f32, each block starts at a row
#      offset that is a multiple of 8 and column 0 (sublane/lane aligned) ----
W_COLS = 48
R_EMB = 0                         # (IN,    H2)    embedder  [Wr | Wi]
R_W1 = R_EMB + IN                 # (H2,    H3x2)  enc Linear(H,3H)   block
R_W2 = R_W1 + H2                  # (H3x2,  BN2)   enc Linear(3H,BN)  block
R_W3 = R_W2 + H3x2                # (BN2,   BN3x2) dec Linear(BN,3BN) block
R_W4 = R_W3 + BN2                 # (BN3x2, H2)    dec Linear(3BN,H)  block
R_DE = R_W4 + BN3x2               # (H2,    IN)    deembedder [Wd_r ; Wd_i]
W_ROWS = R_DE + H2                # 160

# ---- bias / LayerNorm slab layout: one row per vector, (16, 48) f32 ----
B_EMB, B_LN1G, B_LN1B, B_B1, B_B2, B_LN2G, B_LN2B, B_B3, B_B4, B_DE = range(10)
B_ROWS = 16
B_COLS = 48

OUT_W = 128  # lane-dense output slab: cols [0:8]=y_r [8:16]=y_i [16:32]=x_hat


# --------------------------- in-kernel math helpers ---------------------------
def _gelu(x):
    # ComplexGELU applied component-wise (tanh approximation).
    return jax.nn.gelu(x, approximate=True)


def _cplx_layernorm_cat(h, g_cat, b_cat, half, eps=1e-5):
    """ComplexLayerNorm on an [xr | xi] concatenated activation."""
    hr = h[:, :half]
    hi = h[:, half:]
    mur = jnp.mean(hr, axis=-1, keepdims=True)
    mui = jnp.mean(hi, axis=-1, keepdims=True)
    cr = hr - mur
    ci = hi - mui
    var = jnp.mean(cr * cr + ci * ci, axis=-1, keepdims=True)
    inv = jax.lax.rsqrt(var + eps)
    nr = cr * inv
    ni = ci * inv
    gr = g_cat[:, :half]
    gi = g_cat[:, half:]
    br = b_cat[:, :half]
    bi = b_cat[:, half:]
    # complex affine: (gr + i gi)(nr + i ni) + (br + i bi)
    return jnp.concatenate([gr * nr - gi * ni + br,
                            gr * ni + gi * nr + bi], axis=-1)


# --------------------------- the fused Pallas kernel --------------------------
def lkis_kernel(x_ref, w_ref, b_ref, out_ref):
    x = x_ref[...]                                             # (TB, IN)

    # embedder Linear(IN -> 2H); view_as_complex even/odd columns already
    # split into [Wr | Wi] in the weight slab -> output is [er | ei].
    e = (jnp.dot(x, w_ref[R_EMB:R_EMB + IN, :H2],
                 preferred_element_type=jnp.float32)
         + b_ref[B_EMB:B_EMB + 1, :H2])

    # encoder DeepMLP: ComplexLN -> Linear(H,3H) -> GELU -> Linear(3H,BN)
    h = _cplx_layernorm_cat(e, b_ref[B_LN1G:B_LN1G + 1, :H2],
                            b_ref[B_LN1B:B_LN1B + 1, :H2], HIDDEN)
    h = (jnp.dot(h, w_ref[R_W1:R_W1 + H2, :H3x2],
                 preferred_element_type=jnp.float32)
         + b_ref[B_B1:B_B1 + 1, :H3x2])
    h = _gelu(h)
    y = (jnp.dot(h, w_ref[R_W2:R_W2 + H3x2, :BN2],
                 preferred_element_type=jnp.float32)
         + b_ref[B_B2:B_B2 + 1, :BN2])                         # [yr | yi]

    # decoder DeepMLP: ComplexLN -> Linear(BN,3BN) -> GELU -> Linear(3BN,H)
    d = _cplx_layernorm_cat(y, b_ref[B_LN2G:B_LN2G + 1, :BN2],
                            b_ref[B_LN2B:B_LN2B + 1, :BN2], BOTTLENECK)
    d = (jnp.dot(d, w_ref[R_W3:R_W3 + BN2, :BN3x2],
                 preferred_element_type=jnp.float32)
         + b_ref[B_B3:B_B3 + 1, :BN3x2])
    d = _gelu(d)
    d = (jnp.dot(d, w_ref[R_W4:R_W4 + BN3x2, :H2],
                 preferred_element_type=jnp.float32)
         + b_ref[B_B4:B_B4 + 1, :H2])                          # [dr | di]

    # deembedder Linear(2H -> IN); view_as_real row interleave folded into the
    # row-split [Wd_r ; Wd_i] block of the weight slab.
    xhat = (jnp.dot(d, w_ref[R_DE:R_DE + H2, :IN],
                    preferred_element_type=jnp.float32)
            + b_ref[B_DE:B_DE + 1, :IN])

    # single lane-dense (TB, 128) store: [yr | yi | xhat | zero pad]
    pad = jnp.zeros((y.shape[0], OUT_W - BN2 - IN), jnp.float32)
    out_ref[...] = jnp.concatenate([y, xhat, pad], axis=-1)


# --------------------------- parameter init (raw, torch-like) -----------------
def init_raw_params(key):
    ks = iter(jax.random.split(key, 40))

    def lin(fan_in, fan_out):
        bound = 1.0 / math.sqrt(fan_in)
        w = jax.random.uniform(next(ks), (fan_in, fan_out), jnp.float32,
                               -bound, bound)
        b = jax.random.uniform(next(ks), (fan_out,), jnp.float32,
                               -bound, bound)
        return w, b

    def clin(fan_in, fan_out):
        wr, br = lin(fan_in, fan_out)
        wi, bi = lin(fan_in, fan_out)
        return wr, wi, br, bi

    raw = {}
    # embedder: Linear(input_dim*delay, hidden*2) -- real weights
    raw['w_emb'], raw['b_emb'] = lin(IN, HIDDEN * 2)
    # encoder ComplexLayerNorm(hidden): weight 1+0j, bias 0 (default init)
    raw['ln1_g'] = jnp.ones((HIDDEN,), jnp.complex64)
    raw['ln1_b'] = jnp.zeros((HIDDEN,), jnp.complex64)
    raw['w1r'], raw['w1i'], raw['b1r'], raw['b1i'] = clin(HIDDEN, MULT * HIDDEN)
    raw['w2r'], raw['w2i'], raw['b2r'], raw['b2i'] = clin(MULT * HIDDEN, BOTTLENECK)
    # decoder ComplexLayerNorm(bottleneck)
    raw['ln2_g'] = jnp.ones((BOTTLENECK,), jnp.complex64)
    raw['ln2_b'] = jnp.zeros((BOTTLENECK,), jnp.complex64)
    raw['w3r'], raw['w3i'], raw['b3r'], raw['b3i'] = clin(BOTTLENECK, MULT * BOTTLENECK)
    raw['w4r'], raw['w4i'], raw['b4r'], raw['b4i'] = clin(MULT * BOTTLENECK, HIDDEN)
    # deembedder: Linear(hidden*2, input_dim*delay) -- real weights
    raw['w_de'], raw['b_de'] = lin(HIDDEN * 2, IN)
    # self.koopman = eye(BOTTLENECK) exists in __init__ but is unused in
    # forward(), so it is not packed.
    return raw


# --------------------------- one-time packing into slabs ----------------------
def pack_params(raw):
    def blk(wr, wi):
        # complex linear as one real block matmul: [xr|xi] @ [[Wr,Wi],[-Wi,Wr]]
        return jnp.concatenate(
            [jnp.concatenate([wr, wi], axis=1),
             jnp.concatenate([-wi, wr], axis=1)], axis=0)

    # embedder even/odd column split (view_as_complex convention)
    we_r, we_i = raw['w_emb'][:, 0::2], raw['w_emb'][:, 1::2]
    w_emb_blk = jnp.concatenate([we_r, we_i], axis=1)                  # (IN, H2)
    be = jnp.concatenate([raw['b_emb'][0::2], raw['b_emb'][1::2]])

    w1 = blk(raw['w1r'], raw['w1i'])
    b1 = jnp.concatenate([raw['b1r'], raw['b1i']])
    w2 = blk(raw['w2r'], raw['w2i'])
    b2 = jnp.concatenate([raw['b2r'], raw['b2i']])
    w3 = blk(raw['w3r'], raw['w3i'])
    b3 = jnp.concatenate([raw['b3r'], raw['b3i']])
    w4 = blk(raw['w4r'], raw['w4i'])
    b4 = jnp.concatenate([raw['b4r'], raw['b4i']])

    # deembedder even/odd row split (view_as_real + flatten convention)
    wd_r, wd_i = raw['w_de'][0::2, :], raw['w_de'][1::2, :]
    w_de_blk = jnp.concatenate([wd_r, wd_i], axis=0)                   # (H2, IN)

    w_slab = jnp.zeros((W_ROWS, W_COLS), jnp.float32)
    w_slab = w_slab.at[R_EMB:R_EMB + IN, :H2].set(w_emb_blk)
    w_slab = w_slab.at[R_W1:R_W1 + H2, :H3x2].set(w1)
    w_slab = w_slab.at[R_W2:R_W2 + H3x2, :BN2].set(w2)
    w_slab = w_slab.at[R_W3:R_W3 + BN2, :BN3x2].set(w3)
    w_slab = w_slab.at[R_W4:R_W4 + BN3x2, :H2].set(w4)
    w_slab = w_slab.at[R_DE:R_DE + H2, :IN].set(w_de_blk)

    ln1g = jnp.concatenate([jnp.real(raw['ln1_g']), jnp.imag(raw['ln1_g'])])
    ln1b = jnp.concatenate([jnp.real(raw['ln1_b']), jnp.imag(raw['ln1_b'])])
    ln2g = jnp.concatenate([jnp.real(raw['ln2_g']), jnp.imag(raw['ln2_g'])])
    ln2b = jnp.concatenate([jnp.real(raw['ln2_b']), jnp.imag(raw['ln2_b'])])

    rows = [be, ln1g, ln1b, b1, b2, ln2g, ln2b, b3, b4, raw['b_de']]
    b_slab = jnp.zeros((B_ROWS, B_COLS), jnp.float32)
    for i, v in enumerate(rows):
        b_slab = b_slab.at[i, :v.shape[0]].set(v.astype(jnp.float32))

    return jax.device_put(w_slab), jax.device_put(b_slab)


# --------------------------- wrapper -------------------------------------------
def lkis_forward(x, slabs):
    w_slab, b_slab = slabs
    bsz = x.shape[0]
    x_flat = x.reshape(bsz, IN)

    out = pl.pallas_call(
        lkis_kernel,
        out_shape=jax.ShapeDtypeStruct((bsz, OUT_W), jnp.float32),
        grid=(bsz // TB,),
        in_specs=[
            pl.BlockSpec((TB, IN), lambda i: (i, 0)),
            pl.BlockSpec((W_ROWS, W_COLS), lambda i: (0, 0)),
            pl.BlockSpec((B_ROWS, B_COLS), lambda i: (0, 0)),
        ],
        out_specs=pl.BlockSpec((TB, OUT_W), lambda i: (i, 0)),
        compiler_params=pltpu.CompilerParams(
            dimension_semantics=("parallel",)),
    )(x_flat, w_slab, b_slab)

    y = (out[:, :BOTTLENECK] + 1j * out[:, BOTTLENECK:BN2]).astype(jnp.complex64)
    x_hat = out[:, BN2:BN2 + IN].reshape(bsz, DELAY, INPUT_DIM)
    return y, x_hat


# --------------------------- pure-JAX reference (complex math) -----------------
def lkis_reference(x, raw):
    bsz = x.shape[0]
    xf = x.reshape(bsz, IN)
    e = xf @ raw['w_emb'] + raw['b_emb']
    z = e.reshape(bsz, HIDDEN, 2)
    z = (z[..., 0] + 1j * z[..., 1]).astype(jnp.complex64)    # view_as_complex

    def c_ln(v, g, b, eps=1e-5):
        mu = jnp.mean(v, axis=-1, keepdims=True)
        c = v - mu
        var = jnp.mean(jnp.abs(c) ** 2, axis=-1, keepdims=True)
        return g * (c * jax.lax.rsqrt(var + eps)) + b

    def c_gelu(v):
        return (jax.nn.gelu(jnp.real(v), approximate=True)
                + 1j * jax.nn.gelu(jnp.imag(v), approximate=True)).astype(jnp.complex64)

    w1 = raw['w1r'] + 1j * raw['w1i']; b1 = raw['b1r'] + 1j * raw['b1i']
    w2 = raw['w2r'] + 1j * raw['w2i']; b2 = raw['b2r'] + 1j * raw['b2i']
    w3 = raw['w3r'] + 1j * raw['w3i']; b3 = raw['b3r'] + 1j * raw['b3i']
    w4 = raw['w4r'] + 1j * raw['w4i']; b4 = raw['b4r'] + 1j * raw['b4i']

    z = c_ln(z, raw['ln1_g'], raw['ln1_b'])
    z = c_gelu(z @ w1 + b1)
    y = z @ w2 + b2

    d = c_ln(y, raw['ln2_g'], raw['ln2_b'])
    d = c_gelu(d @ w3 + b3)
    d = d @ w4 + b4

    d_real = jnp.stack([jnp.real(d), jnp.imag(d)], axis=-1).reshape(bsz, 2 * HIDDEN)
    xhat = d_real @ raw['w_de'] + raw['b_de']
    return y, xhat.reshape(bsz, DELAY, INPUT_DIM)


# --------------------------- main ----------------------------------------------
if __name__ == "__main__":
    key = jax.random.PRNGKey(0)
    kx, kp = jax.random.split(key)
    x = jax.random.normal(kx, (B, DELAY, INPUT_DIM), jnp.float32)

    raw = init_raw_params(kp)
    slabs = pack_params(raw)          # done once, not per forward call

    fwd = jax.jit(lkis_forward)
    y, x_hat = fwd(x, slabs)
    jax.block_until_ready((y, x_hat))

    y_ref, x_hat_ref = lkis_reference(x, raw)
    np.testing.assert_allclose(np.asarray(y), np.asarray(y_ref),
                               rtol=1e-4, atol=1e-4)
    np.testing.assert_allclose(np.asarray(x_hat), np.asarray(x_hat_ref),
                               rtol=1e-4, atol=1e-4)
    print("KERNEL_OK")
</pallas_src>

<mosaic_0001>
module attributes {stable_mosaic.version = 11 : i64} {
  func.func @lkis_kernel(%arg0: i32, %arg1: memref<8x16xf32, #tpu.memory_space<vmem>>, %arg2: memref<160x48xf32, #tpu.memory_space<vmem>>, %arg3: memref<16x48xf32, #tpu.memory_space<vmem>>, %arg4: memref<8x128xf32, #tpu.memory_space<vmem>>) attributes {dimension_semantics = [#tpu.dimension_semantics<parallel>], iteration_bounds = array<i64: 2>, scalar_prefetch = 0 : i64, scratch_operands = 0 : i64, tpu.core_type = #tpu.core_type<tc>, window_params = [{transform_indices = @transform_0, window_bounds = array<i64: 8, 16>}, {pipeline_mode = #tpu.pipeline_mode<synchronous>, transform_indices = @transform_1, window_bounds = array<i64: 160, 48>}, {pipeline_mode = #tpu.pipeline_mode<synchronous>, transform_indices = @transform_2, window_bounds = array<i64: 16, 48>}, {transform_indices = @transform_3, window_bounds = array<i64: 8, 128>}]} {
    %c0 = arith.constant 0 : index
    %c0_0 = arith.constant 0 : index
    %0 = vector.load %arg1[%c0, %c0_0] : memref<8x16xf32, #tpu.memory_space<vmem>>, vector<8x16xf32>
    %c0_1 = arith.constant 0 : index
    %c0_2 = arith.constant 0 : index
    %1 = vector.load %arg2[%c0_1, %c0_2] : memref<160x48xf32, #tpu.memory_space<vmem>>, vector<16x16xf32>
    %cst = arith.constant dense<0.000000e+00> : vector<8x16xf32>
    %2 = tpu.matmul %0, %1, %cst {dimension_numbers = #tpu.dot_dimension_numbers<[1], [0], [0], [1], [0, 0, 1, 1], [], []>} : vector<8x16xf32>, vector<16x16xf32>, vector<8x16xf32> -> vector<8x16xf32>
    %c0_3 = arith.constant 0 : index
    %c0_4 = arith.constant 0 : index
    %3 = vector.load %arg3[%c0_3, %c0_4] : memref<16x48xf32, #tpu.memory_space<vmem>>, vector<1x16xf32>
    %4 = vector.broadcast %3 : vector<1x16xf32> to vector<8x16xf32>
    %5 = arith.addf %2, %4 : vector<8x16xf32>
    %c1 = arith.constant 1 : index
    %c0_5 = arith.constant 0 : index
    %6 = vector.load %arg3[%c1, %c0_5] : memref<16x48xf32, #tpu.memory_space<vmem>>, vector<1x16xf32>
    %c2 = arith.constant 2 : index
    %c0_6 = arith.constant 0 : index
    %7 = vector.load %arg3[%c2, %c0_6] : memref<16x48xf32, #tpu.memory_space<vmem>>, vector<1x16xf32>
    %8 = vector.extract_strided_slice %5 {offsets = [0, 0], sizes = [8, 8], strides = [1, 1]} : vector<8x16xf32> to vector<8x8xf32>
    %9 = vector.extract_strided_slice %5 {offsets = [0, 8], sizes = [8, 8], strides = [1, 1]} : vector<8x16xf32> to vector<8x8xf32>
    %cst_7 = arith.constant dense<0.000000e+00> : vector<8xf32>
    %10 = vector.multi_reduction <add>, %8, %cst_7 [1] : vector<8x8xf32> to vector<8xf32>
    %11 = vector.shape_cast %10 : vector<8xf32> to vector<8x1xf32>
    %cst_8 = arith.constant 8.000000e+00 : f32
    %12 = vector.broadcast %cst_8 : f32 to vector<8x1xf32>
    %13 = arith.divf %11, %12 : vector<8x1xf32>
    %cst_9 = arith.constant dense<0.000000e+00> : vector<8xf32>
    %14 = vector.multi_reduction <add>, %9, %cst_9 [1] : vector<8x8xf32> to vector<8xf32>
    %15 = vector.shape_cast %14 : vector<8xf32> to vector<8x1xf32>
    %cst_10 = arith.constant 8.000000e+00 : f32
    %16 = vector.broadcast %cst_10 : f32 to vector<8x1xf32>
    %17 = arith.divf %15, %16 : vector<8x1xf32>
    %18 = vector.broadcast %13 : vector<8x1xf32> to vector<8x8xf32>
    %19 = arith.subf %8, %18 : vector<8x8xf32>
    %20 = vector.broadcast %17 : vector<8x1xf32> to vector<8x8xf32>
    %21 = arith.subf %9, %20 : vector<8x8xf32>
    %22 = arith.mulf %19, %19 : vector<8x8xf32>
    %23 = arith.mulf %21, %21 : vector<8x8xf32>
    %24 = arith.addf %22, %23 : vector<8x8xf32>
    %cst_11 = arith.constant dense<0.000000e+00> : vector<8xf32>
    %25 = vector.multi_reduction <add>, %24, %cst_11 [1] : vector<8x8xf32> to vector<8xf32>
    %26 = vector.shape_cast %25 : vector<8xf32> to vector<8x1xf32>
    %cst_12 = arith.constant 8.000000e+00 : f32
    %27 = vector.broadcast %cst_12 : f32 to vector<8x1xf32>
    %28 = arith.divf %26, %27 : vector<8x1xf32>
    %cst_13 = arith.constant 9.99999974E-6 : f32
    %29 = vector.broadcast %cst_13 : f32 to vector<8x1xf32>
    %30 = arith.addf %28, %29 : vector<8x1xf32>
    %31 = math.rsqrt %30 : vector<8x1xf32>
    %32 = vector.broadcast %31 : vector<8x1xf32> to vector<8x8xf32>
    %33 = arith.mulf %19, %32 : vector<8x8xf32>
    %34 = vector.broadcast %31 : vector<8x1xf32> to vector<8x8xf32>
    %35 = arith.mulf %21, %34 : vector<8x8xf32>
    %36 = vector.extract_strided_slice %6 {offsets = [0, 0], sizes = [1, 8], strides = [1, 1]} : vector<1x16xf32> to vector<1x8xf32>
    %37 = vector.extract_strided_slice %6 {offsets = [0, 8], sizes = [1, 8], strides = [1, 1]} : vector<1x16xf32> to vector<1x8xf32>
    %38 = vector.extract_strided_slice %7 {offsets = [0, 0], sizes = [1, 8], strides = [1, 1]} : vector<1x16xf32> to vector<1x8xf32>
    %39 = vector.extract_strided_slice %7 {offsets = [0, 8], sizes = [1, 8], strides = [1, 1]} : vector<1x16xf32> to vector<1x8xf32>
    %40 = vector.broadcast %36 : vector<1x8xf32> to vector<8x8xf32>
    %41 = arith.mulf %40, %33 : vector<8x8xf32>
    %42 = vector.broadcast %37 : vector<1x8xf32> to vector<8x8xf32>
    %43 = arith.mulf %42, %35 : vector<8x8xf32>
    %44 = arith.subf %41, %43 : vector<8x8xf32>
    %45 = vector.broadcast %38 : vector<1x8xf32> to vector<8x8xf32>
    %46 = arith.addf %44, %45 : vector<8x8xf32>
    %47 = vector.broadcast %36 : vector<1x8xf32> to vector<8x8xf32>
    %48 = arith.mulf %47, %35 : vector<8x8xf32>
    %49 = vector.broadcast %37 : vector<1x8xf32> to vector<8x8xf32>
    %50 = arith.mulf %49, %33 : vector<8x8xf32>
    %51 = arith.addf %48, %50 : vector<8x8xf32>
    %52 = vector.broadcast %39 : vector<1x8xf32> to vector<8x8xf32>
    %53 = arith.addf %51, %52 : vector<8x8xf32>
    %54 = tpu.concatenate %46, %53 in 1 : vector<8x8xf32>, vector<8x8xf32> -> vector<8x16xf32>
    %c16 = arith.constant 16 : index
    %c0_14 = arith.constant 0 : index
    %55 = vector.load %arg2[%c16, %c0_14] : memref<160x48xf32, #tpu.memory_space<vmem>>, vector<16x48xf32>
    %cst_15 = arith.constant dense<0.000000e+00> : vector<8x48xf32>
    %56 = tpu.matmul %54, %55, %cst_15 {dimension_numbers = #tpu.dot_dimension_numbers<[1], [0], [0], [1], [0, 0, 1, 1], [], []>} : vector<8x16xf32>, vector<16x48xf32>, vector<8x48xf32> -> vector<8x48xf32>
    %c3 = arith.constant 3 : index
    %c0_16 = arith.constant 0 : index
    %57 = vector.load %arg3[%c3, %c0_16] : memref<16x48xf32, #tpu.memory_space<vmem>>, vector<1x48xf32>
    %58 = vector.broadcast %57 : vector<1x48xf32> to vector<8x48xf32>
    %59 = arith.addf %56, %58 : vector<8x48xf32>
    %60 = arith.mulf %59, %59 : vector<8x48xf32>
    %61 = arith.mulf %59, %60 : vector<8x48xf32>
    %cst_17 = arith.constant 4.471500e-02 : f32
    %62 = vector.broadcast %cst_17 : f32 to vector<8x48xf32>
    %63 = arith.mulf %62, %61 : vector<8x48xf32>
    %64 = arith.addf %59, %63 : vector<8x48xf32>
    %cst_18 = arith.constant 0.797884583 : f32
    %65 = vector.broadcast %cst_18 : f32 to vector<8x48xf32>
    %66 = arith.mulf %65, %64 : vector<8x48xf32>
    %67 = math.tanh %66 : vector<8x48xf32>
    %cst_19 = arith.constant 1.000000e+00 : f32
    %68 = vector.broadcast %cst_19 : f32 to vector<8x48xf32>
    %69 = arith.addf %68, %67 : vector<8x48xf32>
    %cst_20 = arith.constant 5.000000e-01 : f32
    %70 = vector.broadcast %cst_20 : f32 to vector<8x48xf32>
    %71 = arith.mulf %70, %69 : vector<8x48xf32>
    %72 = arith.mulf %59, %71 : vector<8x48xf32>
    %c32 = arith.constant 32 : index
    %c0_21 = arith.constant 0 : index
    %73 = vector.load %arg2[%c32, %c0_21] : memref<160x48xf32, #tpu.memory_space<vmem>>, vector<48x16xf32>
    %cst_22 = arith.constant dense<0.000000e+00> : vector<8x16xf32>
    %74 = tpu.matmul %72, %73, %cst_22 {dimension_numbers = #tpu.dot_dimension_numbers<[1], [0], [0], [1], [0, 0, 1, 1], [], []>} : vector<8x48xf32>, vector<48x16xf32>, vector<8x16xf32> -> vector<8x16xf32>
    %c4 = arith.constant 4 : index
    %c0_23 = arith.constant 0 : index
    %75 = vector.load %arg3[%c4, %c0_23] : memref<16x48xf32, #tpu.memory_space<vmem>>, vector<1x16xf32>
    %76 = vector.broadcast %75 : vector<1x16xf32> to vector<8x16xf32>
    %77 = arith.addf %74, %76 : vector<8x16xf32>
    %c5 = arith.constant 5 : index
    %c0_24 = arith.constant 0 : index
    %78 = vector.load %arg3[%c5, %c0_24] : memref<16x48xf32, #tpu.memory_space<vmem>>, vector<1x16xf32>
    %c6 = arith.constant 6 : index
    %c0_25 = arith.constant 0 : index
    %79 = vector.load %arg3[%c6, %c0_25] : memref<16x48xf32, #tpu.memory_space<vmem>>, vector<1x16xf32>
    %80 = vector.extract_strided_slice %77 {offsets = [0, 0], sizes = [8, 8], strides = [1, 1]} : vector<8x16xf32> to vector<8x8xf32>
    %81 = vector.extract_strided_slice %77 {offsets = [0, 8], sizes = [8, 8], strides = [1, 1]} : vector<8x16xf32> to vector<8x8xf32>
    %cst_26 = arith.constant dense<0.000000e+00> : vector<8xf32>
    %82 = vector.multi_reduction <add>, %80, %cst_26 [1] : vector<8x8xf32> to vector<8xf32>
    %83 = vector.shape_cast %82 : vector<8xf32> to vector<8x1xf32>
    %cst_27 = arith.constant 8.000000e+00 : f32
    %84 = vector.broadcast %cst_27 : f32 to vector<8x1xf32>
    %85 = arith.divf %83, %84 : vector<8x1xf32>
    %cst_28 = arith.constant dense<0.000000e+00> : vector<8xf32>
    %86 = vector.multi_reduction <add>, %81, %cst_28 [1] : vector<8x8xf32> to vector<8xf32>
    %87 = vector.shape_cast %86 : vector<8xf32> to vector<8x1xf32>
    %cst_29 = arith.constant 8.000000e+00 : f32
    %88 = vector.broadcast %cst_29 : f32 to vector<8x1xf32>
    %89 = arith.divf %87, %88 : vector<8x1xf32>
    %90 = vector.broadcast %85 : vector<8x1xf32> to vector<8x8xf32>
    %91 = arith.subf %80, %90 : vector<8x8xf32>
    %92 = vector.broadcast %89 : vector<8x1xf32> to vector<8x8xf32>
    %93 = arith.subf %81, %92 : vector<8x8xf32>
    %94 = arith.mulf %91, %91 : vector<8x8xf32>
    %95 = arith.mulf %93, %93 : vector<8x8xf32>
    %96 = arith.addf %94, %95 : vector<8x8xf32>
    %cst_30 = arith.constant dense<0.000000e+00> : vector<8xf32>
    %97 = vector.multi_reduction <add>, %96, %cst_30 [1] : vector<8x8xf32> to vector<8xf32>
    %98 = vector.shape_cast %97 : vector<8xf32> to vector<8x1xf32>
    %cst_31 = arith.constant 8.000000e+00 : f32
    %99 = vector.broadcast %cst_31 : f32 to vector<8x1xf32>
    %100 = arith.divf %98, %99 : vector<8x1xf32>
    %cst_32 = arith.constant 9.99999974E-6 : f32
    %101 = vector.broadcast %cst_32 : f32 to vector<8x1xf32>
    %102 = arith.addf %100, %101 : vector<8x1xf32>
    %103 = math.rsqrt %102 : vector<8x1xf32>
    %104 = vector.broadcast %103 : vector<8x1xf32> to vector<8x8xf32>
    %105 = arith.mulf %91, %104 : vector<8x8xf32>
    %106 = vector.broadcast %103 : vector<8x1xf32> to vector<8x8xf32>
    %107 = arith.mulf %93, %106 : vector<8x8xf32>
    %108 = vector.extract_strided_slice %78 {offsets = [0, 0], sizes = [1, 8], strides = [1, 1]} : vector<1x16xf32> to vector<1x8xf32>
    %109 = vector.extract_strided_slice %78 {offsets = [0, 8], sizes = [1, 8], strides = [1, 1]} : vector<1x16xf32> to vector<1x8xf32>
    %110 = vector.extract_strided_slice %79 {offsets = [0, 0], sizes = [1, 8], strides = [1, 1]} : vector<1x16xf32> to vector<1x8xf32>
    %111 = vector.extract_strided_slice %79 {offsets = [0, 8], sizes = [1, 8], strides = [1, 1]} : vector<1x16xf32> to vector<1x8xf32>
    %112 = vector.broadcast %108 : vector<1x8xf32> to vector<8x8xf32>
    %113 = arith.mulf %112, %105 : vector<8x8xf32>
    %114 = vector.broadcast %109 : vector<1x8xf32> to vector<8x8xf32>
    %115 = arith.mulf %114, %107 : vector<8x8xf32>
    %116 = arith.subf %113, %115 : vector<8x8xf32>
    %117 = vector.broadcast %110 : vector<1x8xf32> to vector<8x8xf32>
    %118 = arith.addf %116, %117 : vector<8x8xf32>
    %119 = vector.broadcast %108 : vector<1x8xf32> to vector<8x8xf32>
    %120 = arith.mulf %119, %107 : vector<8x8xf32>
    %121 = vector.broadcast %109 : vector<1x8xf32> to vector<8x8xf32>
    %122 = arith.mulf %121, %105 : vector<8x8xf32>
    %123 = arith.addf %120, %122 : vector<8x8xf32>
    %124 = vector.broadcast %111 : vector<1x8xf32> to vector<8x8xf32>
    %125 = arith.addf %123, %124 : vector<8x8xf32>
    %126 = tpu.concatenate %118, %125 in 1 : vector<8x8xf32>, vector<8x8xf32> -> vector<8x16xf32>
    %c80 = arith.constant 80 : index
    %c0_33 = arith.constant 0 : index
    %127 = vector.load %arg2[%c80, %c0_33] : memref<160x48xf32, #tpu.memory_space<vmem>>, vector<16x48xf32>
    %cst_34 = arith.constant dense<0.000000e+00> : vector<8x48xf32>
    %128 = tpu.matmul %126, %127, %cst_34 {dimension_numbers = #tpu.dot_dimension_numbers<[1], [0], [0], [1], [0, 0, 1, 1], [], []>} : vector<8x16xf32>, vector<16x48xf32>, vector<8x48xf32> -> vector<8x48xf32>
    %c7 = arith.constant 7 : index
    %c0_35 = arith.constant 0 : index
    %129 = vector.load %arg3[%c7, %c0_35] : memref<16x48xf32, #tpu.memory_space<vmem>>, vector<1x48xf32>
    %130 = vector.broadcast %129 : vector<1x48xf32> to vector<8x48xf32>
    %131 = arith.addf %128, %130 : vector<8x48xf32>
    %132 = arith.mulf %131, %131 : vector<8x48xf32>
    %133 = arith.mulf %131, %132 : vector<8x48xf32>
    %cst_36 = arith.constant 4.471500e-02 : f32
    %134 = vector.broadcast %cst_36 : f32 to vector<8x48xf32>
    %135 = arith.mulf %134, %133 : vector<8x48xf32>
    %136 = arith.addf %131, %135 : vector<8x48xf32>
    %cst_37 = arith.constant 0.797884583 : f32
    %137 = vector.broadcast %cst_37 : f32 to vector<8x48xf32>
    %138 = arith.mulf %137, %136 : vector<8x48xf32>
    %139 = math.tanh %138 : vector<8x48xf32>
    %cst_38 = arith.constant 1.000000e+00 : f32
    %140 = vector.broadcast %cst_38 : f32 to vector<8x48xf32>
    %141 = arith.addf %140, %139 : vector<8x48xf32>
    %cst_39 = arith.constant 5.000000e-01 : f32
    %142 = vector.broadcast %cst_39 : f32 to vector<8x48xf32>
    %143 = arith.mulf %142, %141 : vector<8x48xf32>
    %144 = arith.mulf %131, %143 : vector<8x48xf32>
    %c96 = arith.constant 96 : index
    %c0_40 = arith.constant 0 : index
    %145 = vector.load %arg2[%c96, %c0_40] : memref<160x48xf32, #tpu.memory_space<vmem>>, vector<48x16xf32>
    %cst_41 = arith.constant dense<0.000000e+00> : vector<8x16xf32>
    %146 = tpu.matmul %144, %145, %cst_41 {dimension_numbers = #tpu.dot_dimension_numbers<[1], [0], [0], [1], [0, 0, 1, 1], [], []>} : vector<8x48xf32>, vector<48x16xf32>, vector<8x16xf32> -> vector<8x16xf32>
    %c8 = arith.constant 8 : index
    %c0_42 = arith.constant 0 : index
    %147 = vector.load %arg3[%c8, %c0_42] : memref<16x48xf32, #tpu.memory_space<vmem>>, vector<1x16xf32>
    %148 = vector.broadcast %147 : vector<1x16xf32> to vector<8x16xf32>
    %149 = arith.addf %146, %148 : vector<8x16xf32>
    %c144 = arith.constant 144 : index
    %c0_43 = arith.constant 0 : index
    %150 = vector.load %arg2[%c144, %c0_43] : memref<160x48xf32, #tpu.memory_space<vmem>>, vector<16x16xf32>
    %cst_44 = arith.constant dense<0.000000e+00> : vector<8x16xf32>
    %151 = tpu.matmul %149, %150, %cst_44 {dimension_numbers = #tpu.dot_dimension_numbers<[1], [0], [0], [1], [0, 0, 1, 1], [], []>} : vector<8x16xf32>, vector<16x16xf32>, vector<8x16xf32> -> vector<8x16xf32>
    %c9 = arith.constant 9 : index
    %c0_45 = arith.constant 0 : index
    %152 = vector.load %arg3[%c9, %c0_45] : memref<16x48xf32, #tpu.memory_space<vmem>>, vector<1x16xf32>
    %153 = vector.broadcast %152 : vector<1x16xf32> to vector<8x16xf32>
    %154 = arith.addf %151, %153 : vector<8x16xf32>
    %cst_46 = arith.constant 0.000000e+00 : f32
    %155 = vector.broadcast %cst_46 : f32 to vector<8x96xf32>
    %156 = tpu.concatenate %77, %154, %155 in 1 : vector<8x16xf32>, vector<8x16xf32>, vector<8x96xf32> -> vector<8x128xf32>
    %c0_47 = arith.constant 0 : index
    %c0_48 = arith.constant 0 : index
    %157 = vector.load %arg4[%c0_47, %c0_48] : memref<8x128xf32, #tpu.memory_space<vmem>>, vector<8x128xf32>
    tpu.vector_store %arg4[%c0_47, %c0_48], %156 {strides = array<i32>} : memref<8x128xf32, #tpu.memory_space<vmem>>, vector<8x128xf32>,
    return
  }
  func.func @transform_0(%arg0: i32) -> (i32, i32) {
    %c0_i32 = arith.constant 0 : i32
    %c0_i32_0 = arith.constant 0 : i32
    return %arg0, %c0_i32 : i32, i32
  }
  func.func @transform_1(%arg0: i32) -> (i32, i32) {
    %c0_i32 = arith.constant 0 : i32
    %c0_i32_0 = arith.constant 0 : i32
    %c0_i32_1 = arith.constant 0 : i32
    return %c0_i32, %c0_i32_0 : i32, i32
  }
  func.func @transform_2(%arg0: i32) -> (i32, i32) {
    %c0_i32 = arith.constant 0 : i32
    %c0_i32_0 = arith.constant 0 : i32
    %c0_i32_1 = arith.constant 0 : i32
    return %c0_i32, %c0_i32_0 : i32, i32
  }
  func.func @transform_3(%arg0: i32) -> (i32, i32) {
    %c0_i32 = arith.constant 0 : i32
    %c0_i32_0 = arith.constant 0 : i32
    return %arg0, %c0_i32 : i32, i32
  }
}

</mosaic_0001>

<bundles_post_ra>
// kernel: custom-call
= control target key start
LH: loop header
LB: loop body
LE: loop exit
PB: predicated region body
PF: predicated region fallthrough
CT: control target
= control target key end

     0   :  { %s62_s0 = inlined_call_operand.vmem [shape: f32[16,8], index: 0, kind: input, shape index: {}]   ;;  %s63_s1 = inlined_call_operand.vmem [shape: f32[16,8], index: 1, kind: input, shape index: {}]   ;;  %s64_s2 = inlined_call_operand.vmem [shape: c64[16,8], index: 2, kind: output, shape index: {}]  }
   0x1   :  { %v5_v0 = vld [vmem:[%s62_s0] sm:$0xff]  ;;  %v18_v1 = vld [vmem:[%s62_s0 + $0x8] sm:$0xff] }
   0x2   :  { %v11_v2 = vld [vmem:[%s63_s1] sm:$0xff]  ;;  %6 = vst [vmem:[%s64_s2] sm:$0xff] %v5_v0  ;;  %19 = vst [vmem:[%s64_s2 + $0x8] sm:$0xff] %v18_v1  ;;  %v21_v3 = vld [vmem:[%s63_s1 + $0x8] sm:$0xff] }
   0x3   :  { %20 = vst [vmem:[%s64_s2 + $0x10] sm:$0xff] %v11_v2  ;;  %22 = vst [vmem:[%s64_s2 + $0x18] sm:$0xff] %v21_v3 }

// kernel: lkis_forward.1
= control target key start
LH: loop header
LB: loop body
LE: loop exit
PB: predicated region body
PF: predicated region fallthrough
CT: control target
= control target key end

     0   :  { %s1077_s12 = smov 0   ;;  %s1251_s0 = inlined_call_operand.vmem [shape: f32[16,16], index: 0, kind: input, shape index: {}]   ;;  %s1252_s1 = inlined_call_operand.vmem [shape: f32[160,48], index: 1, kind: input, shape index: {}]   ;;  %s1253_s2 = inlined_call_operand.vmem [shape: f32[16,48], index: 2, kind: input, shape index: {}]   ;;  %s1254_s3 = inlined_call_operand.vmem [shape: f32[16,128], index: 3, kind: output, shape index: {}]  }
   0x1 LB: > { %s882_s13 = sadd.s32 4294967295, %s1049_s12   ;;  %p886_p0 = scmp.ge.s32.totalorder %s1049_s12, 1  ;;  %s1049_s12 = sphi %s1077_s12, %s13_s12  }
   0x2   : > { %p136_p1 = scmp.lt.s32.totalorder %s1049_s12, 3 }
   0x4   : > { %p137_p2 = pnand %p886_p0, %p136_p1 }
   0x5   : > { %v167_v0 = vld [vmem:[%s1252_s1] sm:$0xff] (!%p137_p2)  ;;  %v168_v1 = vld [vmem:[%s1252_s1 + $0x8] sm:$0xff] (!%p137_p2)  ;;  %p158_p3 = scmp.lt.s32.totalorder (!%p137_p2), %s882_s13, 1  ;;  %v1051_v2 = vmov (!%p137_p2), 0.0|0.0   ;;  %vm1052_vm0 = vmmov (!%p137_p2), 0   ;;  %v1053_v4 = vmov (!%p137_p2), 0.0  }
   0x6   : > { %140 = sbr.rel (%p137_p2) target bundleno = 3259 (0xcbb), region = 32  ;;  %991 = vmatprep.subr.bf16.mxu0 (!%p137_p2), %v1051_v2  ;;  %v992_v3 = vpack.c.bf16 (!%p137_p2), %v168_v1, %v167_v0  ;;  %937 = vmatprep.mubr.msk.f32.mxu0 (!%p137_p2), %vm1052_vm0, %v1053_v4  ;;  %vm174_vm1 = vcmask (!%p137_p2), 130048   ;;  %v889_v6 = vld [vmem:[%s1253_s2] ss:$0 sm:$0xff] (!%p137_p2)  ;;  %vm250_vm2 = vcmask (!%p137_p2), 64512   ;;  %s1054_s24 = smov (!%p137_p2), 120  }
   0x7   : > { %994 = vmatprep.subr.bf16.mxu1 (!%p137_p2), %v1051_v2  ;;  %944 = vmatprep.mubr.msk.f32.mxu1 (!%p137_p2), %vm1052_vm0, %v1053_v4  ;;  %s1055_s25 = smov (!%p137_p2), 8   ;;  %v892_v30 = vld [vmem:[%s1253_s2 + $0x2] ss:$0 sm:$0xff] (!%p137_p2)  ;;  %v891_v31 = vld [vmem:[%s1253_s2 + $0x1] ss:$0 sm:$0xff] (!%p137_p2)  ;;  %v322_v33 = vld [vmem:[%s1252_s1 + $0x10] sm:$0xff] (!%p137_p2) }
   0x8   : > { %993 = vmatpush3.bf16.msra.mxu0 (!%p137_p2), %v992_v3  ;;  %v323_v34 = vld [vmem:[%s1252_s1 + $0x18] sm:$0xff] (!%p137_p2)  ;;  %v411_v50 = vld [vmem:[%s1252_s1 + $0x20] sm:$0xff] (!%p137_p2)  ;;  %v412_v51 = vld [vmem:[%s1252_s1 + $0x28] sm:$0xff] (!%p137_p2)  ;;  %vm422_vm3 = vcmask (!%p137_p2), 392192   ;;  %s1056_s7 = smov (!%p137_p2), 16   ;;  %vm826_vm4 = vcmask (!%p137_p2), 261120  }
   0x9   : > { %997 = vmatprep.subr.bf16.mxu0 (!%p137_p2), %v1051_v2  ;;  %v995_v35 = vpack.c.bf16 (!%p137_p2), %v323_v34, %v322_v33  ;;  %v998_v52 = vpack.c.bf16 (!%p137_p2), %v412_v51, %v411_v50  ;;  %v413_v53 = vld [vmem:[%s1252_s1 + $0x30] sm:$0xff] (!%p137_p2)  ;;  %v414_v54 = vld [vmem:[%s1252_s1 + $0x38] sm:$0xff] (!%p137_p2)  ;;  %v415_v56 = vld [vmem:[%s1252_s1 + $0x40] sm:$0xff] (!%p137_p2) }
   0xa   : > { %v1001_v55 = vpack.c.bf16 (!%p137_p2), %v414_v54, %v413_v53  ;;  %v416_v57 = vld [vmem:[%s1252_s1 + $0x48] sm:$0xff] (!%p137_p2)  ;;  %v893_v59 = vld [vmem:[%s1253_s2 + $0x3] ss:$0 sm:$0xff] (!%p137_p2)  ;;  %v898_v34 = vld [vmem:[%s1253_s2 + $0x6] ss:$0 sm:$0xff] (!%p137_p2) }
   0xb   : > { %996 = vmatpush3.bf16.msra.mxu1 (!%p137_p2), %v995_v35  ;;  %v1004_v58 = vpack.c.bf16 (!%p137_p2), %v416_v57, %v415_v56  ;;  %v568_v35 = vld [vmem:[%s1252_s1 + $0x50] sm:$0xff] (!%p137_p2)  ;;  %v657_v54 = vld [vmem:[%s1252_s1 + $0x60] sm:$0xff] (!%p137_p2) }
   0xc   : > { %1006 = vmatprep.subr.bf16.mxu1 (!%p137_p2), %v1051_v2  ;;  %v659_v57 = vld [vmem:[%s1252_s1 + $0x70] sm:$0xff] (!%p137_p2) }
   0xd   : > { %s1256_s13 = smov (!%p158_p3, %s882_s13), 1 }
   0xe   : > { %s887_s18 = sshll.u32 %s1256_s13, 3 }
   0xf   : > { %s161_s21 = scalar_lea.vmem %s1251_s0, %s887_s18  ;;  %s165_s9 = scalar_lea.vmem %s1254_s3, %s887_s18 }
  0x10   : > { %v166_v5 = vld [vmem:[%s161_s21] sm:$0xff] }
  0x11   : > { %938 = vmatmul.mubr.msk.f32.vlgmr.msra.gmra.mrb[0].mxu0 %vm174_vm1, %v166_v5 }
  0x12   : > { %959 = vmatprep.mubr.msk.f32.mxu0 %vm1052_vm0, %v1053_v4  ;;  %999 = vmatpush3.bf16.msra.mxu0 %v998_v52 }
  0x13   : > { %1000 = vmatprep.subr.bf16.mxu0 %v1051_v2 }
  0x16   : > { %1002 = vmatpush3.bf16.msra.mxu0 %v1001_v55  ;;  %v658_v55 = vld [vmem:[%s1252_s1 + $0x68] sm:$0xff] }
  0x17   : > { %1003 = vmatprep.subr.bf16.mxu0 %v1051_v2  ;;  %v1010_v56 = vpack.c.bf16 %v658_v55, %v657_v54 }
  0x1a   : > { %1005 = vmatpush3.bf16.msra.mxu0 %v1004_v58 }
  0x1b   : > { %1018 = vmatprep.subr.bf16.mxu0 %v1051_v2 }
  0xe4   : > { %v244_v7 = vpop.f32.mrb[0].mxu0 }
  0xe5   : > { %v245_v8 = vadd.f32 %v889_v6, %v244_v7  ;;  %v939_v9 = vpop.f32.mrb[1].mxu0 }
  0xe7   : > { %257 = vrot.lane.b32.xlu0 %v245_v8, %s1054_s24  ;;  %v251_v10 = vsel %vm250_vm2, %v245_v8, 0.0 }
  0xe8   : > { %252 = vadd.xlane.f32.xlu1 %v251_v10  ;;  %v895_v10 = vld [vmem:[%s1253_s2 + $0x4] ss:$0 sm:$0xff] }
 0x159   : > { %v258_v11 = vpop.permute.xlu0 %257 }
 0x15a   : > { %v260_v12 = vsel %vm250_vm2, %v258_v11, 0.0 }
 0x15b   : > { %261 = vadd.xlane.f32.xlu0 %v260_v12 }
 0x175   : > { %v253_v17 = vpop.xlane.xlu1 %252 }
 0x176   : > { %v255_v18 = vmul.f32 0.125, %v253_v17 }
 0x178   : > { %v264_v19 = vsub.f32 %v245_v8, %v255_v18 }
 0x17a   : > { %v266_v20 = vmul.f32 %v264_v19, %v264_v19 }
 0x1e8   : > { %v262_v13 = vpop.xlane.xlu0 %261 }
 0x1e9   : > { %v263_v14 = vmul.f32 0.125, %v262_v13 }
 0x1eb   : > { %v265_v15 = vsub.f32 %v245_v8, %v263_v14 }
 0x1ed   : > { %v267_v16 = vmul.f32 %v265_v15, %v265_v15 }
 0x1ef   : > { %269 = vrot.lane.b32.xlu1 %v267_v16, %s1054_s24 }
 0x261   : > { %v270_v21 = vpop.permute.xlu1 %269 }
 0x262   : > { %v272_v22 = vadd.f32 %v270_v21, %v266_v20 }
 0x264   : > { %v273_v23 = vsel %vm250_vm2, %v272_v22, 0.0 }
 0x265   : > { %274 = vadd.xlane.f32.xlu1 %v273_v23 }
 0x2f2   : > { %v275_v24 = vpop.xlane.xlu1 %274 }
 0x2f3   : > { %v276_v25 = vmul.f32 0.125, %v275_v24 }
 0x2f5   : > { %v277_v26 = vadd.f32 1e-05, %v276_v25 }
 0x2f7   : > { %1035 = vrsqrt.f32 %v277_v26 }
 0x301   : > { %v1036_v27 = vpop.eup %1035 }
 0x302   : > { %v279_v28 = vmul.f32 %v1036_v27, %v264_v19  ;;  %v280_v29 = vmul.f32 %v1036_v27, %v265_v15 }
 0x304   : > { %303 = vrot.lane.b32.xlu0 %v279_v28, %s1055_s25  ;;  %v286_v32 = vmul.f32 %v891_v31, %v280_v29  ;;  %v285_v45 = vmul.f32 %v891_v31, %v279_v28 }
 0x308   : > { %298 = vrot.lane.b32.xlu0 %v280_v29, %s1054_s24 }
 0x30c   : > { %313 = vrot.lane.b32.xlu0 %v892_v30, %s1054_s24 }
 0x310   : > { %288 = vrot.lane.b32.xlu0 %v286_v32, %s1054_s24 }
 0x376   : > { %v304_v36 = vpop.permute.xlu0 %303 }
 0x377   : > { %v306_v37 = vmul.f32 %v891_v31, %v304_v36  ;;  %v569_v36 = vld [vmem:[%s1252_s1 + $0x58] sm:$0xff] }
 0x379   : > { %308 = vrot.lane.b32.xlu1 %v306_v37, %s1054_s24  ;;  %v1007_v37 = vpack.c.bf16 %v569_v36, %v568_v35 }
 0x37a   : > { %v299_v38 = vpop.permute.xlu0 %298 }
 0x37b   : > { %v301_v39 = vmul.f32 %v891_v31, %v299_v38  ;;  %v897_v38 = vld [vmem:[%s1253_s2 + $0x5] ss:$0 sm:$0xff] }
 0x37e   : > { %v314_v42 = vpop.permute.xlu0 %313 }
 0x382   : > { %v289_v44 = vpop.permute.xlu0 %288 }
 0x383   : > { %v291_v46 = vsub.f32 %v285_v45, %v289_v44 }
 0x385   : > { %v296_v47 = vadd.f32 %v892_v30, %v291_v46 }
 0x3eb   : > { %v309_v40 = vpop.permute.xlu1 %308 }
 0x3ec   : > { %v311_v41 = vadd.f32 %v309_v40, %v301_v39 }
 0x3ee   : > { %v316_v43 = vadd.f32 %v314_v42, %v311_v41 }
 0x3f0   : > { %318 = vrot.lane.b32.xlu0 %v316_v43, %s1055_s25 }
 0x462   : > { %v319_v48 = vpop.permute.xlu0 %318 }
 0x463   : > { %v321_v49 = vsel %vm250_vm2, %v296_v47, %v319_v48 }
 0x464   : > { %945 = vmatmul.mubr.msk.f32.vlgmr.msra.gmra.mrb[0].mxu1 %vm174_vm1, %v321_v49 }
 0x465   : > { %966 = vmatprep.mubr.msk.f32.mxu1 %vm1052_vm0, %v1053_v4  ;;  %1008 = vmatpush3.bf16.msra.mxu1 %v1007_v37 }
 0x466   : > { %1009 = vmatprep.subr.bf16.mxu1 %v1051_v2 }
 0x537   : > { %v398_v60 = vpop.f32.mrb[0].mxu1 }
 0x538   : > { %v399_v61 = vadd.f32 %v893_v59, %v398_v60  ;;  %v946_v62 = vpop.f32.mrb[1].mxu1  ;;  %v661_v59 = vld [vmem:[%s1252_s1 + $0x80] sm:$0xff]  ;;  %v662_v60 = vld [vmem:[%s1252_s1 + $0x88] sm:$0xff] }
 0x539   : > { %v741_v62 = vld [vmem:[%s1252_s1 + $0x90] sm:$0xff] }
 0x53a   : > { %v402_v63 = vmul.f32 %v399_v61, %v399_v61 }
 0x53c   : > { %v403_v0 = vmul.f32 %v402_v63, %v399_v61  ;;  %v742_v63 = vld [vmem:[%s1252_s1 + $0x98] sm:$0xff] }
 0x53e   : > { %v404_v1 = vmul.f32 0.044715, %v403_v0  ;;  %v1019_v0 = vpack.c.bf16 %v742_v63, %v741_v62 }
 0x540   : > { %v405_v3 = vadd.f32 %v404_v1, %v399_v61 }
 0x542   : > { %v406_v5 = vmul.f32 0.7978846, %v405_v3 }
 0x544   : > { %1037 = vtanh.f32 %v406_v5 }
 0x54e   : > { %v1038_v6 = vpop.eup %1037 }
 0x54f   : > { %v408_v7 = vadd.f32 1.0, %v1038_v6 }
 0x551   : > { %v409_v8 = vmul.f32 0.5, %v408_v7 }
 0x553   : > { %v410_v9 = vmul.f32 %v409_v8, %v399_v61  ;;  %v1016_v61 = vpack.c.bf16 %v662_v60, %v661_v59 }
 0x555   : > { %960 = vmatmul.mubr.msk.f32.vlgmr.msra.gmra.mrb[2].mxu0 %vm422_vm3, %v410_v9 }
 0x556   : > { %988 = vmatprep.mubr.msk.f32.mxu0 %vm1052_vm0, %v1053_v4  ;;  %1020 = vmatpush3.bf16.msra.mxu0 %v1019_v0 }
 0x628   : > { %v492_v11 = vpop.f32.mrb[2].mxu0 }
 0x629   : > { %v1170_v12 = vadd.f32 %v895_v10, %v492_v11  ;;  %v961_v13 = vpop.f32.mrb[3].mxu0 }
 0x62b   : > { %503 = vrot.lane.b32.xlu0 %v1170_v12, %s1054_s24  ;;  %v498_v14 = vsel %vm250_vm2, %v1170_v12, 0.0 }
 0x64a   : > { %499 = vadd.xlane.f32.xlu0 %v498_v14 }
 0x69d   : > { %v504_v15 = vpop.permute.xlu0 %503 }
 0x69e   : > { %v506_v16 = vsel %vm250_vm2, %v504_v15, 0.0 }
 0x69f   : > { %507 = vadd.xlane.f32.xlu1 %v506_v16  ;;  %v901_v16 = vld [vmem:[%s1253_s2 + $0x8] ss:$0 sm:$0xff] }
 0x6d7   : > { %v500_v21 = vpop.xlane.xlu0 %499 }
 0x6d8   : > { %v501_v22 = vmul.f32 0.125, %v500_v21 }
 0x6da   : > { %v510_v23 = vsub.f32 %v1170_v12, %v501_v22 }
 0x6dc   : > { %v512_v24 = vmul.f32 %v510_v23, %v510_v23 }
 0x72c   : > { %v508_v17 = vpop.xlane.xlu1 %507 }
 0x72d   : > { %v509_v18 = vmul.f32 0.125, %v508_v17 }
 0x72f   : > { %v511_v19 = vsub.f32 %v1170_v12, %v509_v18 }
 0x731   : > { %v513_v20 = vmul.f32 %v511_v19, %v511_v19 }
 0x733   : > { %515 = vrot.lane.b32.xlu0 %v513_v20, %s1054_s24  ;;  %v903_v20 = vld [vmem:[%s1253_s2 + $0x9] ss:$0 sm:$0xff] }
 0x7a5   : > { %v516_v25 = vpop.permute.xlu0 %515 }
 0x7a6   : > { %v518_v26 = vadd.f32 %v516_v25, %v512_v24 }
 0x7a8   : > { %v519_v27 = vsel %vm250_vm2, %v518_v26, 0.0 }
 0x7a9   : > { %520 = vadd.xlane.f32.xlu1 %v519_v27 }
 0x836   : > { %v521_v28 = vpop.xlane.xlu1 %520 }
 0x837   : > { %v522_v29 = vmul.f32 0.125, %v521_v28 }
 0x839   : > { %v523_v30 = vadd.f32 1e-05, %v522_v29 }
 0x83b   : > { %1039 = vrsqrt.f32 %v523_v30 }
 0x845   : > { %v1040_v31 = vpop.eup %1039 }
 0x846   : > { %v526_v32 = vmul.f32 %v1040_v31, %v511_v19  ;;  %v525_v33 = vmul.f32 %v1040_v31, %v510_v23 }
 0x848   : > { %544 = vrot.lane.b32.xlu0 %v526_v32, %s1054_s24  ;;  %549 = vrot.lane.b32.xlu1 %v525_v33, %s1055_s25  ;;  %v532_v41 = vmul.f32 %v897_v38, %v526_v32  ;;  %v531_v49 = vmul.f32 %v897_v38, %v525_v33 }
 0x84c   : > { %559 = vrot.lane.b32.xlu0 %v898_v34, %s1054_s24 }
 0x8ba   : > { %v550_v39 = vpop.permute.xlu1 %549  ;;  %v545_v42 = vpop.permute.xlu0 %544 }
 0x8bb   : > { %v552_v40 = vmul.f32 %v897_v38, %v550_v39  ;;  %v547_v43 = vmul.f32 %v897_v38, %v545_v42 }
 0x8bd   : > { %554 = vrot.lane.b32.xlu1 %v552_v40, %s1054_s24 }
 0x8be   : > { %v560_v45 = vpop.permute.xlu0 %559 }
 0x8c1   : > { %534 = vrot.lane.b32.xlu1 %v532_v41, %s1054_s24 }
 0x92f   : > { %v555_v44 = vpop.permute.xlu1 %554 }
 0x930   : > { %v557_v46 = vadd.f32 %v555_v44, %v547_v43 }
 0x932   : > { %v562_v47 = vadd.f32 %v560_v45, %v557_v46 }
 0x933   : > { %v535_v48 = vpop.permute.xlu1 %534 }
 0x934   : > { %564 = vrot.lane.b32.xlu0 %v562_v47, %s1055_s25  ;;  %v537_v50 = vsub.f32 %v531_v49, %v535_v48 }
 0x936   : > { %v542_v51 = vadd.f32 %v898_v34, %v537_v50 }
 0x9a6   : > { %v565_v52 = vpop.permute.xlu0 %564 }
 0x9a7   : > { %v567_v53 = vsel %vm250_vm2, %v542_v51, %v565_v52 }
 0x9a8   : > { %967 = vmatmul.mubr.msk.f32.vlgmr.msra.gmra.mrb[2].mxu1 %vm174_vm1, %v567_v53 }
 0x9a9   : > { %981 = vmatprep.mubr.msk.f32.mxu1 %vm1052_vm0, %v1053_v4  ;;  %1011 = vmatpush3.bf16.msra.mxu1 %v1010_v56  ;;  %v660_v4 = vld [vmem:[%s1252_s1 + $0x78] sm:$0xff] }
 0x9aa   : > { %1012 = vmatprep.subr.bf16.mxu1 %v1051_v2  ;;  %v1013_v58 = vpack.c.bf16 %v660_v4, %v659_v57 }
 0x9ad   : > { %1014 = vmatpush3.bf16.msra.mxu1 %v1013_v58 }
 0x9ae   : > { %1015 = vmatprep.subr.bf16.mxu1 %v1051_v2  ;;  %v899_v2 = vld [vmem:[%s1253_s2 + $0x7] ss:$0 sm:$0xff] }
 0x9b1   : > { %1017 = vmatpush3.bf16.msra.mxu1 %v1016_v61 }
 0xa7b   : > { %v644_v1 = vpop.f32.mrb[2].mxu1 }
 0xa7c   : > { %v645_v3 = vadd.f32 %v899_v2, %v644_v1  ;;  %v968_v5 = vpop.f32.mrb[3].mxu1 }
 0xa7e   : > { %v648_v6 = vmul.f32 %v645_v3, %v645_v3 }
 0xa80   : > { %v649_v7 = vmul.f32 %v648_v6, %v645_v3 }
 0xa82   : > { %v650_v8 = vmul.f32 0.044715, %v649_v7 }
 0xa84   : > { %v651_v9 = vadd.f32 %v650_v8, %v645_v3 }
 0xa86   : > { %v652_v10 = vmul.f32 0.7978846, %v651_v9 }
 0xa88   : > { %1041 = vtanh.f32 %v652_v10 }
 0xa92   : > { %v1042_v11 = vpop.eup %1041 }
 0xa93   : > { %v654_v13 = vadd.f32 1.0, %v1042_v11 }
 0xa95   : > { %v655_v14 = vmul.f32 0.5, %v654_v13 }
 0xa97   : > { %v656_v15 = vmul.f32 %v655_v14, %v645_v3 }
 0xa99   : > { %982 = vmatmul.mubr.msk.f32.vlgmr.msra.gmra.mrb[4].mxu1 %vm422_vm3, %v656_v15 }
 0xb6c   : > { %v737_v17 = vpop.f32.mrb[4].mxu1 }
 0xb6d   : > { %v738_v18 = vadd.f32 %v901_v16, %v737_v17  ;;  %v983_v19 = vpop.f32.mrb[5].mxu1 }
 0xb6f   : > { %989 = vmatmul.mubr.msk.f32.vlgmr.msra.gmra.mrb[4].mxu0 %vm174_vm1, %v738_v18 }
 0xc42   : > { %v817_v21 = vpop.f32.mrb[4].mxu0 }
 0xc43   : > { %v818_v22 = vadd.f32 %v903_v20, %v817_v21  ;;  %v990_v23 = vpop.f32.mrb[5].mxu0 }
 0xc45   : > { %822 = vrot.lane.b32.xlu1 %v818_v22, %s1056_s7 }
 0xcb7   : > { %v823_v24 = vpop.permute.xlu1 %822 }
 0xcb8   : > { %v825_v25 = vsel %vm174_vm1, %v1170_v12, %v823_v24 }
 0xcb9   : > { %v827_v26 = vsel %vm826_vm4, %v825_v25, 0.0 }
 0xcba   : > { %828 = vst [vmem:[%s165_s9] sm:$0xff] %v827_v26 }
 0xcbb PF: > { %s13_s12 = sadd.s32 1, %s1049_s12  }
 0xcbc   : > { %p10_p4 = scmp.ge.s32.totalorder %s13_s12, 4  }
 0xcbe   :  { %12 = sbr.rel (!%p10_p4) target bundleno = 1 (0x1), region = 62 }

</bundles_post_ra>
